<compile_context>
chip_gen: v7x
topology: tpu7x:2x2x1
jax: 0.10.0
libtpu: 0.0.40
codegen_flags: <defaults>
</compile_context>

<pallas_src>
import functools

import jax
import jax.numpy as jnp
from jax.experimental import pallas as pl
from jax.experimental.pallas import tpu as pltpu


def _conv_tile_kernel(x_ref, w_ref, b_ref, o_ref, patch_ref, *,
                      KH, KW, stride, Cin, Wq, L):
    """One (batch, row-tile) step of reflection-padded conv.

    x_ref    : (1, 1, s*s*Cin, Lx)  bf16, residue-regrouped, flattened row tile
    w_ref    : (Cout, KH*KW*Cin)    bf16, dense contraction layout
    b_ref    : (Cout, 1)            f32
    o_ref    : (1, 1, Cout, L)      out dtype, L = TH*Wq (lane-dense)
    patch_ref: (KH*KW*Cin, L)       bf16 VMEM scratch (in-VMEM im2col)
    """
    s = stride
    # Gather all KH*KW taps once per tile, then issue ONE wide-contraction
    # MXU matmul (K = KH*KW*Cin) instead of KH*KW narrow K=Cin dots.
    for kh in range(KH):
        for kw in range(KW):
            rr = (kh % s) * s + (kw % s)          # stride-residue slab
            start = (kh // s) * Wq + (kw // s)    # static flat tap offset
            tap = kh * KW + kw
            patch_ref[pl.ds(tap * Cin, Cin), :] = (
                x_ref[0, 0, pl.ds(rr * Cin, Cin), pl.ds(start, L)])
    acc = jnp.dot(w_ref[...], patch_ref[...],
                  preferred_element_type=jnp.float32)
    o_ref[0, 0] = (acc + b_ref[...]).astype(o_ref.dtype)


def conv_layer_forward(x_nchw, weight, bias, *, stride,
                       compute_dtype=jnp.bfloat16, tile_rows=None):
    """ReflectionPad2d(kernel_size // 2) followed by Conv2d(kernel_size, stride).

    x_nchw : (N, Cin, H, W)   weight : (Cout, Cin, KH, KW)   bias : (Cout,)
    returns: (N, Cout, Ho, Wo), dtype of x.  Streams are bf16, accumulation f32.
    """
    N, Cin, H, W = x_nchw.shape
    Cout, Cin_w, KH, KW = weight.shape
    assert Cin_w == Cin
    assert KH == KW, "ConvLayer uses square kernels (padding = kernel_size // 2)."
    s = int(stride)
    pad = KH // 2
    assert pad < H and pad < W, "ReflectionPad2d needs padding < spatial size."

    out_dtype = x_nchw.dtype
    out_bytes = jnp.dtype(out_dtype).itemsize

    # --- wrapper prep, all in compute dtype (halves pre-kernel HBM traffic) ---
    xq = x_nchw.astype(compute_dtype)
    xp = jnp.pad(xq, ((0, 0), (0, 0), (pad, pad), (pad, pad)), mode="reflect")
    Hp, Wp = H + 2 * pad, W + 2 * pad
    Ho = (Hp - KH) // s + 1
    Wo = (Wp - KW) // s + 1

    qh_max, qw_max = (KH - 1) // s, (KW - 1) // s
    extra = 1 if qw_max > 0 else 0        # absorbs the flat-slice column overrun
    Wq = Wo + qw_max

    # --- spatial row tiling (target a few MiB per block) ---
    if tile_rows is None:
        bytes_per_row = Wq * (s * s * Cin * 2 + KH * KW * Cin * 2
                              + Cout * out_bytes)
        TH = max(1, int((8 * 1024 * 1024) // max(bytes_per_row, 1)))
        if Ho >= 8:
            TH = max(TH, 8)
        TH = min(TH, Ho)
    else:
        TH = max(1, min(int(tile_rows), Ho))
    n_tiles = int(pl.cdiv(Ho, TH))
    Hot = n_tiles * TH                    # padded output rows (cropped later)
    THq = TH + qh_max + extra             # tile rows incl. halo
    Hgr = Hot + qh_max + extra            # regrouped rows kept in HBM
    C2 = s * s * Cin
    L = TH * Wq                           # per-tile lane-dense output width
    Lx = THq * Wq

    if s == 1:
        # Space-to-depth regroup is the identity for stride 1 (Wq == Wp);
        # only pad rows so every tile (with halo) is in range.
        xr = jnp.pad(xp, ((0, 0), (0, 0), (0, Hgr - Hp), (0, 0)))
    else:
        h_need = (Ho - 1) * s + KH
        w_need = (Wo - 1) * s + KW
        xp = xp[:, :, :h_need, :w_need]
        xp = jnp.pad(xp, ((0, 0), (0, 0),
                          (0, Hgr * s - h_need), (0, Wq * s - w_need)))
        xr = xp.reshape(N, Cin, Hgr, s, Wq, s).transpose(0, 3, 5, 1, 2, 4)
        xr = xr.reshape(N, C2, Hgr, Wq)   # residues merged with Cin

    # Row tiles with a qh(+1)-row halo; identity when one tile covers Ho.
    if n_tiles == 1:
        xt = xr.reshape(N, 1, C2, Lx)
    else:
        row_idx = (jnp.arange(n_tiles)[:, None] * TH
                   + jnp.arange(THq)[None, :]).reshape(-1)
        xt = jnp.take(xr, row_idx, axis=2)                    # (N, C2, nt*THq, Wq)
        xt = xt.reshape(N, C2, n_tiles, THq, Wq).transpose(0, 2, 1, 3, 4)
        xt = xt.reshape(N, n_tiles, C2, Lx)

    # Weights: (Cout, Cin, KH, KW) -> (Cout, KH*KW*Cin), contraction on lanes.
    wr = jnp.transpose(weight, (0, 2, 3, 1)).reshape(Cout, KH * KW * Cin)
    wr = wr.astype(compute_dtype)
    b2 = bias.reshape(Cout, 1).astype(jnp.float32)

    kernel = functools.partial(_conv_tile_kernel, KH=KH, KW=KW, stride=s,
                               Cin=Cin, Wq=Wq, L=L)

    # Generation-aware VMEM budget (~48 MiB on v7x, ~96 MiB on v5e/v6e).
    try:
        vmem_cap = int(getattr(pltpu.get_tpu_info(), "vmem_capacity_bytes",
                               64 * 1024 * 1024))
    except Exception:
        vmem_cap = 64 * 1024 * 1024
    vmem_limit = max(32 * 1024 * 1024,
                     min(int(0.75 * vmem_cap), 100 * 1024 * 1024))

    flops = 2 * N * Ho * Wo * Cout * Cin * KH * KW
    bytes_accessed = (xt.size * xt.dtype.itemsize
                      + wr.size * wr.dtype.itemsize
                      + N * n_tiles * Cout * L * out_bytes)

    out = pl.pallas_call(
        kernel,
        out_shape=jax.ShapeDtypeStruct((N, n_tiles, Cout, L), out_dtype),
        grid_spec=pltpu.PrefetchScalarGridSpec(
            num_scalar_prefetch=0,
            grid=(N, n_tiles),
            in_specs=[
                pl.BlockSpec((1, 1, C2, Lx), lambda n, t: (n, t, 0, 0)),
                pl.BlockSpec((Cout, KH * KW * Cin), lambda n, t: (0, 0)),
                pl.BlockSpec((Cout, 1), lambda n, t: (0, 0)),
            ],
            out_specs=pl.BlockSpec((1, 1, Cout, L), lambda n, t: (n, t, 0, 0)),
            scratch_shapes=[pltpu.VMEM((KH * KW * Cin, L), compute_dtype)],
        ),
        compiler_params=pltpu.CompilerParams(
            dimension_semantics=("parallel", "parallel"),
            vmem_limit_bytes=vmem_limit,
        ),
        cost_estimate=pl.CostEstimate(flops=flops, transcendentals=0,
                                      bytes_accessed=bytes_accessed),
    )(xt, wr, b2)

    # Un-tile rows, crop the Wq -> Wo (and Hot -> Ho) halo; result is NCHW.
    out = out.reshape(N, n_tiles, Cout, TH, Wq).transpose(0, 2, 1, 3, 4)
    out = out.reshape(N, Cout, Hot, Wq)[:, :, :Ho, :Wo]
    return out


if __name__ == "__main__":
    key = jax.random.PRNGKey(0)
    k1, k2, k3, k4, k5 = jax.random.split(key, 5)

    def reference(x, w, b, stride, cast=None):
        pad = w.shape[2] // 2
        xp = jnp.pad(x, ((0, 0), (0, 0), (pad, pad), (pad, pad)), mode="reflect")
        if cast is not None:
            xp, w = xp.astype(cast), w.astype(cast)
        out = jax.lax.conv_general_dilated(
            xp, w, window_strides=(stride, stride), padding="VALID",
            dimension_numbers=("NCHW", "OIHW", "NCHW"),
            preferred_element_type=jnp.float32)
        return out + b.reshape(1, -1, 1, 1)

    # Case 1: ConvLayer(4, 8, kernel_size=3, stride=1) on (2, 4, 16, 16).
    N, Cin, H, W = 2, 4, 16, 16
    Cout, ksize, stride = 8, 3, 1
    x = jax.random.normal(k1, (N, Cin, H, W), dtype=jnp.float32)
    w = 0.1 * jax.random.normal(k2, (Cout, Cin, ksize, ksize), dtype=jnp.float32)
    b = 0.1 * jax.random.normal(k3, (Cout,), dtype=jnp.float32)

    fwd = jax.jit(functools.partial(conv_layer_forward, stride=stride))
    y = jax.block_until_ready(fwd(x, w, b))
    ref_bf = reference(x, w, b, stride, jnp.bfloat16)   # same-precision reference
    ref_f32 = reference(x, w, b, stride)                # full-f32 reference
    assert y.shape == ref_f32.shape, (y.shape, ref_f32.shape)
    assert jnp.allclose(y, ref_bf, atol=2e-3, rtol=2e-3), \
        float(jnp.max(jnp.abs(y - ref_bf)))
    assert jnp.allclose(y, ref_f32, atol=5e-2, rtol=5e-2), \
        float(jnp.max(jnp.abs(y - ref_f32)))

    # Case 2: same config, forced multi-tile spatial grid (exercises halo path).
    fwd_t = jax.jit(functools.partial(conv_layer_forward, stride=stride,
                                      tile_rows=5))
    y_t = jax.block_until_ready(fwd_t(x, w, b))
    assert jnp.allclose(y_t, ref_bf, atol=2e-3, rtol=2e-3), \
        float(jnp.max(jnp.abs(y_t - ref_bf)))

    # Case 3: ConvLayer(3, 8, kernel_size=3, stride=2) on (2, 3, 17, 17).
    x2 = jax.random.normal(k4, (2, 3, 17, 17), dtype=jnp.float32)
    w2 = 0.1 * jax.random.normal(k5, (8, 3, 3, 3), dtype=jnp.float32)
    b2 = 0.05 * jnp.arange(8, dtype=jnp.float32)
    fwd2 = jax.jit(functools.partial(conv_layer_forward, stride=2))
    y2 = jax.block_until_ready(fwd2(x2, w2, b2))
    ref2 = reference(x2, w2, b2, 2, jnp.bfloat16)
    assert y2.shape == ref2.shape, (y2.shape, ref2.shape)
    assert jnp.allclose(y2, ref2, atol=2e-3, rtol=2e-3), \
        float(jnp.max(jnp.abs(y2 - ref2)))

    print("KERNEL_OK")
</pallas_src>

<mosaic_0001>
module attributes {stable_mosaic.version = 11 : i64} {
  func.func @_conv_tile_kernel(%arg0: i32, %arg1: i32, %arg2: memref<1x1x4x342xbf16, #tpu.memory_space<vmem>>, %arg3: memref<8x36xbf16, #tpu.memory_space<vmem>>, %arg4: memref<8x1xf32, #tpu.memory_space<vmem>>, %arg5: memref<1x1x8x288xf32, #tpu.memory_space<vmem>>, %arg6: memref<36x288xbf16, #tpu.memory_space<vmem>>) attributes {dimension_semantics = [#tpu.dimension_semantics<parallel>, #tpu.dimension_semantics<parallel>], iteration_bounds = array<i64: 2, 1>, scalar_prefetch = 0 : i64, scratch_operands = 1 : i64, tpu.core_type = #tpu.core_type<tc>, window_params = [{transform_indices = @transform_0, window_bounds = array<i64: 1, 1, 4, 342>}, {pipeline_mode = #tpu.pipeline_mode<synchronous>, transform_indices = @transform_1, window_bounds = array<i64: 8, 36>}, {pipeline_mode = #tpu.pipeline_mode<synchronous>, transform_indices = @transform_2, window_bounds = array<i64: 8, 1>}, {transform_indices = @transform_3, window_bounds = array<i64: 1, 1, 8, 288>}]} {
    %c0 = arith.constant 0 : index
    %c0_0 = arith.constant 0 : index
    %c0_1 = arith.constant 0 : index
    %c0_2 = arith.constant 0 : index
    %0 = vector.load %arg2[%c0, %c0_0, %c0_1, %c0_2] : memref<1x1x4x342xbf16, #tpu.memory_space<vmem>>, vector<1x1x4x288xbf16>
    %1 = vector.shape_cast %0 : vector<1x1x4x288xbf16> to vector<4x288xbf16>
    %c0_3 = arith.constant 0 : index
    %c0_4 = arith.constant 0 : index
    %2 = vector.load %arg6[%c0_3, %c0_4] : memref<36x288xbf16, #tpu.memory_space<vmem>>, vector<4x288xbf16>
    tpu.vector_store %arg6[%c0_3, %c0_4], %1 {strides = array<i32>} : memref<36x288xbf16, #tpu.memory_space<vmem>>, vector<4x288xbf16>,
    %c0_5 = arith.constant 0 : index
    %c0_6 = arith.constant 0 : index
    %c0_7 = arith.constant 0 : index
    %c1 = arith.constant 1 : index
    %3 = vector.load %arg2[%c0_5, %c0_6, %c0_7, %c1] : memref<1x1x4x342xbf16, #tpu.memory_space<vmem>>, vector<1x1x4x288xbf16>
    %4 = vector.shape_cast %3 : vector<1x1x4x288xbf16> to vector<4x288xbf16>
    %c4 = arith.constant 4 : index
    %c0_8 = arith.constant 0 : index
    %5 = vector.load %arg6[%c4, %c0_8] : memref<36x288xbf16, #tpu.memory_space<vmem>>, vector<4x288xbf16>
    tpu.vector_store %arg6[%c4, %c0_8], %4 {strides = array<i32>} : memref<36x288xbf16, #tpu.memory_space<vmem>>, vector<4x288xbf16>,
    %c0_9 = arith.constant 0 : index
    %c0_10 = arith.constant 0 : index
    %c0_11 = arith.constant 0 : index
    %c2 = arith.constant 2 : index
    %6 = vector.load %arg2[%c0_9, %c0_10, %c0_11, %c2] : memref<1x1x4x342xbf16, #tpu.memory_space<vmem>>, vector<1x1x4x288xbf16>
    %7 = vector.shape_cast %6 : vector<1x1x4x288xbf16> to vector<4x288xbf16>
    %c8 = arith.constant 8 : index
    %c0_12 = arith.constant 0 : index
    %8 = vector.load %arg6[%c8, %c0_12] : memref<36x288xbf16, #tpu.memory_space<vmem>>, vector<4x288xbf16>
    tpu.vector_store %arg6[%c8, %c0_12], %7 {strides = array<i32>} : memref<36x288xbf16, #tpu.memory_space<vmem>>, vector<4x288xbf16>,
    %c0_13 = arith.constant 0 : index
    %c0_14 = arith.constant 0 : index
    %c0_15 = arith.constant 0 : index
    %c18 = arith.constant 18 : index
    %9 = vector.load %arg2[%c0_13, %c0_14, %c0_15, %c18] : memref<1x1x4x342xbf16, #tpu.memory_space<vmem>>, vector<1x1x4x288xbf16>
    %10 = vector.shape_cast %9 : vector<1x1x4x288xbf16> to vector<4x288xbf16>
    %c12 = arith.constant 12 : index
    %c0_16 = arith.constant 0 : index
    %11 = vector.load %arg6[%c12, %c0_16] : memref<36x288xbf16, #tpu.memory_space<vmem>>, vector<4x288xbf16>
    tpu.vector_store %arg6[%c12, %c0_16], %10 {strides = array<i32>} : memref<36x288xbf16, #tpu.memory_space<vmem>>, vector<4x288xbf16>,
    %c0_17 = arith.constant 0 : index
    %c0_18 = arith.constant 0 : index
    %c0_19 = arith.constant 0 : index
    %c19 = arith.constant 19 : index
    %12 = vector.load %arg2[%c0_17, %c0_18, %c0_19, %c19] : memref<1x1x4x342xbf16, #tpu.memory_space<vmem>>, vector<1x1x4x288xbf16>
    %13 = vector.shape_cast %12 : vector<1x1x4x288xbf16> to vector<4x288xbf16>
    %c16 = arith.constant 16 : index
    %c0_20 = arith.constant 0 : index
    %14 = vector.load %arg6[%c16, %c0_20] : memref<36x288xbf16, #tpu.memory_space<vmem>>, vector<4x288xbf16>
    tpu.vector_store %arg6[%c16, %c0_20], %13 {strides = array<i32>} : memref<36x288xbf16, #tpu.memory_space<vmem>>, vector<4x288xbf16>,
    %c0_21 = arith.constant 0 : index
    %c0_22 = arith.constant 0 : index
    %c0_23 = arith.constant 0 : index
    %c20 = arith.constant 20 : index
    %15 = vector.load %arg2[%c0_21, %c0_22, %c0_23, %c20] : memref<1x1x4x342xbf16, #tpu.memory_space<vmem>>, vector<1x1x4x288xbf16>
    %16 = vector.shape_cast %15 : vector<1x1x4x288xbf16> to vector<4x288xbf16>
    %c20_24 = arith.constant 20 : index
    %c0_25 = arith.constant 0 : index
    %17 = vector.load %arg6[%c20_24, %c0_25] : memref<36x288xbf16, #tpu.memory_space<vmem>>, vector<4x288xbf16>
    tpu.vector_store %arg6[%c20_24, %c0_25], %16 {strides = array<i32>} : memref<36x288xbf16, #tpu.memory_space<vmem>>, vector<4x288xbf16>,
    %c0_26 = arith.constant 0 : index
    %c0_27 = arith.constant 0 : index
    %c0_28 = arith.constant 0 : index
    %c36 = arith.constant 36 : index
    %18 = vector.load %arg2[%c0_26, %c0_27, %c0_28, %c36] : memref<1x1x4x342xbf16, #tpu.memory_space<vmem>>, vector<1x1x4x288xbf16>
    %19 = vector.shape_cast %18 : vector<1x1x4x288xbf16> to vector<4x288xbf16>
    %c24 = arith.constant 24 : index
    %c0_29 = arith.constant 0 : index
    %20 = vector.load %arg6[%c24, %c0_29] : memref<36x288xbf16, #tpu.memory_space<vmem>>, vector<4x288xbf16>
    tpu.vector_store %arg6[%c24, %c0_29], %19 {strides = array<i32>} : memref<36x288xbf16, #tpu.memory_space<vmem>>, vector<4x288xbf16>,
    %c0_30 = arith.constant 0 : index
    %c0_31 = arith.constant 0 : index
    %c0_32 = arith.constant 0 : index
    %c37 = arith.constant 37 : index
    %21 = vector.load %arg2[%c0_30, %c0_31, %c0_32, %c37] : memref<1x1x4x342xbf16, #tpu.memory_space<vmem>>, vector<1x1x4x288xbf16>
    %22 = vector.shape_cast %21 : vector<1x1x4x288xbf16> to vector<4x288xbf16>
    %c28 = arith.constant 28 : index
    %c0_33 = arith.constant 0 : index
    %23 = vector.load %arg6[%c28, %c0_33] : memref<36x288xbf16, #tpu.memory_space<vmem>>, vector<4x288xbf16>
    tpu.vector_store %arg6[%c28, %c0_33], %22 {strides = array<i32>} : memref<36x288xbf16, #tpu.memory_space<vmem>>, vector<4x288xbf16>,
    %c0_34 = arith.constant 0 : index
    %c0_35 = arith.constant 0 : index
    %c0_36 = arith.constant 0 : index
    %c38 = arith.constant 38 : index
    %24 = vector.load %arg2[%c0_34, %c0_35, %c0_36, %c38] : memref<1x1x4x342xbf16, #tpu.memory_space<vmem>>, vector<1x1x4x288xbf16>
    %25 = vector.shape_cast %24 : vector<1x1x4x288xbf16> to vector<4x288xbf16>
    %c32 = arith.constant 32 : index
    %c0_37 = arith.constant 0 : index
    %26 = vector.load %arg6[%c32, %c0_37] : memref<36x288xbf16, #tpu.memory_space<vmem>>, vector<4x288xbf16>
    tpu.vector_store %arg6[%c32, %c0_37], %25 {strides = array<i32>} : memref<36x288xbf16, #tpu.memory_space<vmem>>, vector<4x288xbf16>,
    %c0_38 = arith.constant 0 : index
    %c0_39 = arith.constant 0 : index
    %27 = vector.load %arg3[%c0_38, %c0_39] : memref<8x36xbf16, #tpu.memory_space<vmem>>, vector<8x36xbf16>
    %c0_40 = arith.constant 0 : index
    %c0_41 = arith.constant 0 : index
    %28 = vector.load %arg6[%c0_40, %c0_41] : memref<36x288xbf16, #tpu.memory_space<vmem>>, vector<36x288xbf16>
    %cst = arith.constant dense<0.000000e+00> : vector<8x288xf32>
    %29 = tpu.matmul %27, %28, %cst {dimension_numbers = #tpu.dot_dimension_numbers<[1], [0], [0], [1], [0, 0, 1, 1], [], []>} : vector<8x36xbf16>, vector<36x288xbf16>, vector<8x288xf32> -> vector<8x288xf32>
    %c0_42 = arith.constant 0 : index
    %c0_43 = arith.constant 0 : index
    %30 = vector.load %arg4[%c0_42, %c0_43] : memref<8x1xf32, #tpu.memory_space<vmem>>, vector<8x1xf32>
    %31 = vector.broadcast %30 : vector<8x1xf32> to vector<8x288xf32>
    %32 = arith.addf %29, %31 : vector<8x288xf32>
    %c0_44 = arith.constant 0 : index
    %c0_45 = arith.constant 0 : index
    %c0_46 = arith.constant 0 : index
    %c0_47 = arith.constant 0 : index
    %33 = vector.load %arg5[%c0_44, %c0_45, %c0_46, %c0_47] : memref<1x1x8x288xf32, #tpu.memory_space<vmem>>, vector<1x1x8x288xf32>
    %34 = vector.shape_cast %33 : vector<1x1x8x288xf32> to vector<8x288xf32>
    %35 = vector.shape_cast %32 : vector<8x288xf32> to vector<1x1x8x288xf32>
    tpu.vector_store %arg5[%c0_44, %c0_45, %c0_46, %c0_47], %35 {strides = array<i32>} : memref<1x1x8x288xf32, #tpu.memory_space<vmem>>, vector<1x1x8x288xf32>,
    return
  }
  func.func @transform_0(%arg0: i32, %arg1: i32) -> (i32, i32, i32, i32) {
    %c0_i32 = arith.constant 0 : i32
    %c0_i32_0 = arith.constant 0 : i32
    %c0_i32_1 = arith.constant 0 : i32
    return %arg0, %arg1, %c0_i32, %c0_i32_0 : i32, i32, i32, i32
  }
  func.func @transform_1(%arg0: i32, %arg1: i32) -> (i32, i32) {
    %c0_i32 = arith.constant 0 : i32
    %c0_i32_0 = arith.constant 0 : i32
    %c0_i32_1 = arith.constant 0 : i32
    return %c0_i32, %c0_i32_0 : i32, i32
  }
  func.func @transform_2(%arg0: i32, %arg1: i32) -> (i32, i32) {
    %c0_i32 = arith.constant 0 : i32
    %c0_i32_0 = arith.constant 0 : i32
    %c0_i32_1 = arith.constant 0 : i32
    return %c0_i32, %c0_i32_0 : i32, i32
  }
  func.func @transform_3(%arg0: i32, %arg1: i32) -> (i32, i32, i32, i32) {
    %c0_i32 = arith.constant 0 : i32
    %c0_i32_0 = arith.constant 0 : i32
    %c0_i32_1 = arith.constant 0 : i32
    return %arg0, %arg1, %c0_i32, %c0_i32_0 : i32, i32, i32, i32
  }
}

</mosaic_0001>

<bundles_post_ra>
// kernel: conv_layer_forward.1
= control target key start
LH: loop header
LB: loop body
LE: loop exit
PB: predicated region body
PF: predicated region fallthrough
CT: control target
= control target key end

     0   :  { %s870_s12 = smov 0   ;;  %s872_s13 = smov 0   ;;  %s964_s0 = inlined_call_operand.vmem [shape: bf16[2,1,4,342], index: 0, kind: input, shape index: {}]   ;;  %s965_s1 = inlined_call_operand.vmem [shape: bf16[8,36], index: 1, kind: input, shape index: {}]   ;;  %s966_s2 = inlined_call_operand.vmem [shape: f32[8,1], index: 2, kind: input, shape index: {}]   ;;  %s967_s3 = inlined_call_operand.vmem [shape: f32[2,1,8,288], index: 3, kind: output, shape index: {}]  }
   0x1   :  { %s874_s14 = smov 0  }
   0x2 LB: > { %s25_s15 = sadd.s32 1, %s832_s13  ;;  %p724_p0 = scmp.ge.s32.totalorder %s836_s14, 1  ;;  %s836_s14 = sphi %s874_s14, %s13_s14   ;;  %s832_s13 = sphi %s872_s13, %s969_s13   ;;  %s828_s12 = sphi %s870_s12, %s968_s12  }
   0x3   : > { %p27_p1 = scmp.ge.s32.totalorder %s25_s15, 2  ;;  %p157_p2 = scmp.lt.s32.totalorder %s836_s14, 3 }
   0x5   : > { %s971_s15 = smov (%p27_p1, %s25_s15), 0  ;;  %p158_p3 = pnand %p724_p0, %p157_p2 }
   0x6   : > { %p189_p4 = scmp.lt.s32.totalorder (!%p158_p3), %s828_s12, 1  ;;  %v221_v0 = vlaneseq (!%p158_p3)  ;;  %v838_v1 = vmov (!%p158_p3), 1983009808   ;;  %s839_s20 = smov (!%p158_p3), 126   ;;  %vm228_vm0 = vcmask (!%p158_p3), 254976   ;;  %v843_v24 = vmov (!%p158_p3), 0.0  }
   0x7   : > { %161 = sbr.rel (%p158_p3) target bundleno = 399 (0x18f), region = 32  ;;  %v219_v2 = vunpack.c.l.s4 (!%p158_p3), %v838_v1  ;;  %s840_s21 = smov (!%p158_p3), 127   ;;  %746 = vmatprep.subr.bf16.mxu1 (!%p158_p3), %v843_v24  ;;  %vm848_vm1 = vmmov (!%p158_p3), 0   ;;  %v849_v42 = vmov (!%p158_p3), 0   ;;  %v483_v43 = vld [vmem:[%s966_s2] sm:$0xff] (!%p158_p3)  ;;  %vm260_vm2 = vcmask (!%p158_p3), 257026  }
   0x8   : > { %v222_v3 = vshrl.u32 (!%p158_p3), %v221_v0, 7  ;;  %s841_s22 = smov (!%p158_p3), 110   ;;  %s842_s23 = smov (!%p158_p3), 109   ;;  %752 = vmatprep.mubr.msk.bf16.mxu1 (!%p158_p3), %vm848_vm1, %v843_v24  ;;  %575 = vmatprep.mubr.bf16.mxu0 (!%p158_p3), %v849_v42  ;;  %vm253_vm3 = vcmask (!%p158_p3), 1043456   ;;  %vm286_vm4 = vcmask (!%p158_p3), 1031168   ;;  %vm255_vm5 = vcmask (!%p158_p3), 1039360  }
   0x9   : > { %v220_v4 = vunpack.c.0.s8 (!%p158_p3), %v219_v2  ;;  %s844_s24 = smov (!%p158_p3), 108   ;;  %s845_s25 = smov (!%p158_p3), 92   ;;  %794 = vset.pattern.permute.xlu0 (!%p158_p3), %v849_v42  ;;  %vm346_vm6 = vcmask (!%p158_p3), 891904   ;;  %vm316_vm7 = vcmask (!%p158_p3), 900096   ;;  %vm376_vm8 = vcmask (!%p158_p3), 883712  }
   0xa   : > { %s846_s26 = smov (!%p158_p3), 91   ;;  %s847_s27 = smov (!%p158_p3), 90   ;;  %vm406_vm9 = vcmask (!%p158_p3), 752640   ;;  %vm436_vm10 = vcmask (!%p158_p3), 744448   ;;  %vm466_vm11 = vcmask (!%p158_p3), 736256   ;;  %vm533_vm12 = vcmask (!%p158_p3), 1041408  }
   0xb   : > { %v891_v5 = vsub.s32 (!%p158_p3), %v220_v4, %v222_v3  ;;  %vm529_vm13 = vcmask (!%p158_p3), 293888   ;;  %vm626_vm14 = vcmask (!%p158_p3), 261120  }
   0xe   : > { %s973_s12 = smov (!%p189_p4, %s828_s12), 1 }
   0xf   : > { %s756_s16 = smul.u32 6, %s973_s12 }
  0x10   : > { %s757_s5 = smul.u32 24, %s973_s12 }
  0x11   : > { %s896_s19 = scalar_lea.vmem %s964_s0, %s756_s16 }
  0x12   : > { %v262_v6 = vld [vmem:[%s896_s19] sm:$0x3f]  ;;  %s206_s8 = scalar_lea.vmem %s967_s3, %s757_s5 }
  0x13   : > { %v230_v7 = vld [vmem:[%s896_s19] sm:$0x3f]  ;;  %v271_v9 = vrot.slane %v262_v6, %v891_v5  ;;  %v264_v12 = vcombine.high %v262_v6, %v262_v6 }
  0x14   : > { %v292_v8 = vld [vmem:[%s896_s19] sm:$0x3f]  ;;  %v246_v10 = vrot.slane %v230_v7, %v891_v5  ;;  %v232_v14 = vcombine.low %v230_v7, %v230_v7 }
  0x15   : > { %v322_v11 = vld [vmem:[%s896_s19] sm:$0x3f]  ;;  %279 = vrot.lane.b32.xlu1 %v271_v9, %s839_s20  ;;  %v308_v15 = vrot.slane %v292_v8, %v891_v5  ;;  %v278_v19 = vrot.slane %v264_v12, %v891_v5  ;;  %v294_v21 = vcombine.low %v292_v8, %v292_v8 }
  0x16   : > { %v208_v13 = vld [vmem:[%s896_s19] sm:$0x3f]  ;;  %249 = vrot.lane.b32.xlu0 %v246_v10, %s840_s21  ;;  %v331_v16 = vrot.slane %v322_v11, %v891_v5  ;;  %v324_v17 = vcombine.high %v322_v11, %v322_v11  ;;  %v239_v20 = vrot.slane %v232_v14, %v891_v5 }
  0x17   : > { %727 = vst.sshfl [vmem:[#allocation2] sm:$0xf pattern:$0x76325410] %v208_v13  ;;  %v210_v18 = vcombine.high %v208_v13, %v208_v13  ;;  %v352_v22 = vld [vmem:[%s896_s19] sm:$0x3f]  ;;  %v301_v26 = vrot.slane %v294_v21, %v891_v5 }
  0x18   : > { %v338_v25 = vrot.slane %v324_v17, %v891_v5  ;;  %v354_v27 = vcombine.low %v352_v22, %v352_v22  ;;  %v382_v28 = vld [vmem:[%s896_s19] sm:$0x3f]  ;;  %v368_v29 = vrot.slane %v352_v22, %v891_v5 }
  0x19   : > { %311 = vrot.lane.b32.xlu1 %v308_v15, %s841_s22  ;;  %v224_v23 = vrot.slane %v210_v18, %v891_v5  ;;  %v384_v31 = vcombine.high %v382_v28, %v382_v28  ;;  %v412_v32 = vld [vmem:[%s896_s19] sm:$0x3f]  ;;  %v391_v34 = vrot.slane %v382_v28, %v891_v5 }
  0x1a   : > { %339 = vrot.lane.b32.xlu0 %v331_v16, %s842_s23  ;;  %v361_v30 = vrot.slane %v354_v27, %v891_v5  ;;  %v414_v35 = vcombine.low %v412_v32, %v412_v32  ;;  %v442_v36 = vld [vmem:[%s896_s19] sm:$0x3f]  ;;  %v428_v37 = vrot.slane %v412_v32, %v891_v5 }
  0x1b   : > { %229 = vst.msk [vmem:[#allocation2 + $0x8] sm:$0x3] %vm228_vm0, %v224_v23  ;;  %v398_v33 = vrot.slane %v384_v31, %v891_v5  ;;  %v444_v39 = vcombine.high %v442_v36, %v442_v36  ;;  %v451_v41 = vrot.slane %v442_v36, %v891_v5 }
  0x1c   : > { %v421_v38 = vrot.slane %v414_v35, %v891_v5 }
  0x1d   : > { %281 = vrot.lane.b32.xlu1 %v278_v19, %s839_s20  ;;  %v458_v40 = vrot.slane %v444_v39, %v891_v5 }
  0x1e   : > { %247 = vrot.lane.b32.xlu0 %v239_v20, %s840_s21 }
  0x21   : > { %341 = vrot.lane.b32.xlu1 %v338_v25, %s842_s23 }
  0x22   : > { %309 = vrot.lane.b32.xlu0 %v301_v26, %s841_s22 }
  0x25   : > { %371 = vrot.lane.b32.xlu1 %v368_v29, %s844_s24 }
  0x26   : > { %369 = vrot.lane.b32.xlu0 %v361_v30, %s844_s24 }
  0x29   : > { %401 = vrot.lane.b32.xlu1 %v398_v33, %s845_s25 }
  0x2a   : > { %399 = vrot.lane.b32.xlu0 %v391_v34, %s845_s25 }
  0x2d   : > { %431 = vrot.lane.b32.xlu1 %v428_v37, %s846_s26 }
  0x2e   : > { %429 = vrot.lane.b32.xlu0 %v421_v38, %s846_s26 }
  0x31   : > { %461 = vrot.lane.b32.xlu1 %v458_v40, %s847_s27  ;;  %v472_v40 = vld [vmem:[%s965_s1] sm:$0xf] }
  0x32   : > { %459 = vrot.lane.b32.xlu0 %v451_v41, %s847_s27 }
  0x36   : > { %486 = vperm.xlu0 %794, %v483_v43  }
  0x87   : > { %v280_v44 = vpop.permute.xlu1 %279 }
  0x88   : > { %v250_v45 = vpop.permute.xlu0 %249  ;;  %v283_v50 = vrot.slane %v280_v44, 4 }
  0x89   : > { %261 = vst.msk [vmem:[#allocation2 + $0x8] sm:$0xc] %vm260_vm2, %v250_v45  ;;  %v252_v51 = vrot.slane %v250_v45, 4 }
  0x8b   : > { %v312_v46 = vpop.permute.xlu1 %311 }
  0x8c   : > { %v340_v47 = vpop.permute.xlu0 %339  ;;  %321 = vst.msk [vmem:[#allocation2 + $0x14] sm:$0xc] %vm260_vm2, %v312_v46  ;;  %v314_v60 = vrot.slane %v312_v46, 4 }
  0x8d   : > { %v343_v61 = vrot.slane %v340_v47, 4 }
  0x8f   : > { %v282_v48 = vpop.permute.xlu1 %281 }
  0x90   : > { %v248_v49 = vpop.permute.xlu0 %247  ;;  %v284_v52 = vrot.slane %v282_v48, 4  ;;  %291 = vst.msk [vmem:[#allocation2 + $0x14] sm:$0x3] %vm228_vm0, %v282_v48 }
  0x91   : > { %v251_v53 = vrot.slane %v248_v49, 4 }
  0x92   : > { %v285_v54 = vsel %vm253_vm3, %v283_v50, %v284_v52 }
  0x93   : > { %v254_v55 = vsel %vm253_vm3, %v251_v53, %v252_v51  ;;  %v287_v56 = vsel %vm286_vm4, %v280_v44, %v285_v54  ;;  %v342_v58 = vpop.permute.xlu1 %341 }
  0x94   : > { %v256_v57 = vsel %vm255_vm5, %v248_v49, %v254_v55  ;;  %v310_v59 = vpop.permute.xlu0 %309  ;;  %290 = vst [vmem:[#allocation2 + $0xc] sm:$0x33] %v287_v56  ;;  %v344_v62 = vrot.slane %v342_v58, 4  ;;  %351 = vst.msk [vmem:[#allocation2 + $0x20] sm:$0x3] %vm228_vm0, %v342_v58 }
  0x95   : > { %259 = vst [vmem:[#allocation2] sm:$0xcc] %v256_v57  ;;  %v313_v63 = vrot.slane %v310_v59, 4 }
  0x96   : > { %v345_v0 = vsel %vm253_vm3, %v343_v61, %v344_v62 }
  0x97   : > { %v315_v1 = vsel %vm253_vm3, %v313_v63, %v314_v60  ;;  %v347_v2 = vsel %vm346_vm6, %v340_v47, %v345_v0  ;;  %v372_v4 = vpop.permute.xlu1 %371  ;;  %v804_v6 = vld [vmem:[#allocation2 + $0x8] ss:$12 sps:$4 sm:$0xff]  }
  0x98   : > { %v317_v3 = vsel %vm316_vm7, %v310_v59, %v315_v1  ;;  %v370_v5 = vpop.permute.xlu0 %369  ;;  %350 = vst [vmem:[#allocation2 + $0x18] sm:$0x33] %v347_v2  ;;  %v374_v7 = vrot.slane %v372_v4, 4  ;;  %381 = vst.msk [vmem:[#allocation2 + $0x20] sm:$0xc] %vm260_vm2, %v372_v4  ;;  %747 = vmatpush3.bf16.msra.mxu1 %v804_v6 }
  0x99   : > { %320 = vst [vmem:[#allocation2 + $0xc] sm:$0xcc] %v317_v3  ;;  %v373_v8 = vrot.slane %v370_v5, 4  ;;  %748 = vmatprep.subr.bf16.mxu1 %v843_v24 }
  0x9b   : > { %v375_v9 = vsel %vm253_vm3, %v373_v8, %v374_v7  ;;  %v402_v11 = vpop.permute.xlu1 %401 }
  0x9c   : > { %v377_v10 = vsel %vm376_vm8, %v370_v5, %v375_v9  ;;  %v400_v12 = vpop.permute.xlu0 %399  ;;  %v404_v13 = vrot.slane %v402_v11, 4  ;;  %411 = vst.msk [vmem:[#allocation2 + $0x2c] sm:$0x3] %vm228_vm0, %v402_v11  ;;  %v473_v16 = vld [vmem:[#allocation2] sm:$0xff] }
  0x9d   : > { %380 = vst [vmem:[#allocation2 + $0x18] sm:$0xcc] %v377_v10  ;;  %v403_v14 = vrot.slane %v400_v12, 4 }
  0x9f   : > { %v405_v15 = vsel %vm253_vm3, %v403_v14, %v404_v13  ;;  %v432_v18 = vpop.permute.xlu1 %431 }
  0xa0   : > { %v407_v17 = vsel %vm406_vm9, %v400_v12, %v405_v15  ;;  %v430_v19 = vpop.permute.xlu0 %429  ;;  %v475_v20 = vld [vmem:[#allocation2 + $0xc] sm:$0xff]  ;;  %v434_v22 = vrot.slane %v432_v18, 4  ;;  %441 = vst.msk [vmem:[#allocation2 + $0x2c] sm:$0xc] %vm260_vm2, %v432_v18 }
  0xa1   : > { %v805_v21 = vld [vmem:[#allocation2 + $0x4] ss:$12 sps:$4 sm:$0xff]   ;;  %410 = vst [vmem:[#allocation2 + $0x24] sm:$0x33] %v407_v17  ;;  %v433_v23 = vrot.slane %v430_v19, 4  ;;  %v728_v25 = vcombine.low %v473_v16, %v475_v20 }
  0xa2   : > { %543 = vmatprep.subr.bf16.mxu0 %v805_v21 }
  0xa3   : > { %v435_v26 = vsel %vm253_vm3, %v433_v23, %v434_v22  ;;  %544 = vmatpush1.bf16.msra.mxu0 %v728_v25  ;;  %v462_v28 = vpop.permute.xlu1 %461 }
  0xa4   : > { %v437_v27 = vsel %vm436_vm10, %v430_v19, %v435_v26  ;;  %v460_v29 = vpop.permute.xlu0 %459  ;;  %v464_v30 = vrot.slane %v462_v28, 4  ;;  %471 = vst.msk [vmem:[#allocation2 + $0x38] sm:$0x3] %vm228_vm0, %v462_v28 }
  0xa5   : > { %440 = vst [vmem:[#allocation2 + $0x24] sm:$0xcc] %v437_v27  ;;  %v463_v31 = vrot.slane %v460_v29, 4 }
  0xa7   : > { %v465_v32 = vsel %vm253_vm3, %v463_v31, %v464_v30  ;;  %v807_v34 = vld [vmem:[#allocation2 + $0x20] ss:$12 sps:$4 sm:$0xff]  }
  0xa8   : > { %v467_v33 = vsel %vm466_vm11, %v460_v29, %v465_v32  ;;  %749 = vmatpush3.bf16.msra.mxu1 %v807_v34 }
  0xa9   : > { %470 = vst [vmem:[#allocation2 + $0x30] sm:$0x33] %v467_v33  ;;  %750 = vmatprep.subr.bf16.mxu1 %v843_v24 }
  0xab   : > { %v811_v37 = vld [vmem:[#allocation2 + $0x38] ss:$0 sps:$4 sm:$0x33]  }
  0xac   : > { %v808_v35 = vld [vmem:[#allocation2 + $0x1c] ss:$12 sps:$4 sm:$0xff]   ;;  %v810_v36 = vld [vmem:[#allocation2 + $0x18] ss:$12 sps:$4 sm:$0xff]   ;;  %v541_v38 = vsel %vm533_vm12, %v811_v37, 0 }
  0xad   : > { %545 = vmatprep.subr.bf16.mxu0 %v808_v35  ;;  %751 = vmatpush3.bf16.msra.mxu1 %v541_v38 }
  0xae   : > { %546 = vmatpush1.bf16.msra.mxu0 %v810_v36 }
  0xb0   : > { %v481_v39 = vld [vmem:[#allocation2 + $0x30] sm:$0x33]  ;;  %753 = vmatmul.mubr.msk.bf16.vlgmr.msra.gmra.mrb[0].mxu1 %vm529_vm13, %v472_v40 }
  0xb1   : > { %v735_v41 = vcombine.high %v481_v39, %v481_v39  ;;  %v734_v42 = vcombine.low %v481_v39, %v481_v39 }
  0xb3   : > { %737 = vmatprep.subr.msk.bf16.mxu0 %vm533_vm12, %v735_v41  ;;  %v535_v43 = vsel %vm533_vm12, %v734_v42, 0 }
  0xb4   : > { %548 = vmatpush1.bf16.msra.mxu0 %v535_v43 }
  0xb5   : > { %v487_v24 = vpop.permute.xlu0 %486 }
  0xb7   : > { %738 = vmatmul.mubr.msk.bf16.vlgmr.msra.gmra.mrb[0].mxu0 %vm529_vm13, %v472_v40 }
 0x183   : > { %v618_v44 = vpop.f32.mrb[0].mxu1 }
 0x184   : > { %v754_v45 = vpop.f32.mrb[1].mxu1  ;;  %v619_v46 = vadd.f32 %v618_v44, %v487_v24 }
 0x185   : > { %v621_v47 = vpop.f32.mrb[2].mxu1 }
 0x186   : > { %627 = vst.msk [vmem:[%s206_s8 + $0x10] sm:$0xff] %vm626_vm14, %v619_v46  ;;  %v755_v48 = vpop.f32.mrb[3].mxu1 }
 0x18a   : > { %v577_v49 = vpop.f32.mrb[0].mxu0 }
 0x18b   : > { %v578_v50 = vadd.f32 %v577_v49, %v487_v24  ;;  %v579_v51 = vpop.f32.mrb[1].mxu0 }
 0x18c   : > { %v580_v52 = vadd.f32 %v579_v51, %v487_v24  ;;  %v581_v53 = vpop.f32.mrb[2].mxu0 }
 0x18d   : > { %624 = vst [vmem:[%s206_s8] sm:$0xff] %v578_v50  ;;  %v582_v54 = vpop.f32.mrb[3].mxu0 }
 0x18e   : > { %625 = vst [vmem:[%s206_s8 + $0x8] sm:$0xff] %v580_v52 }
 0x18f PF: > { %s13_s14 = sadd.s32 1, %s836_s14   ;;  %s968_s12 = smov %s832_s13 }
 0x190   : > { %p10_p5 = scmp.ge.s32.totalorder %s13_s14, 4   ;;  %s969_s13 = smov %s971_s15 }
 0x192   :  { %12 = sbr.rel (!%p10_p5) target bundleno = 2 (0x2), region = 62 }

</bundles_post_ra>
